<compile_context>
chip_gen: v7x
topology: tpu7x:2x2x1
jax: 0.10.0
libtpu: 0.0.40
codegen_flags: <defaults>
</compile_context>

<pallas_src>
import jax
import jax.numpy as jnp
from jax.experimental import pallas as pl
from jax.experimental.pallas import tpu as pltpu

_MIB = 1024 * 1024


# ---------------------------------------------------------------------------
# Kernels
# ---------------------------------------------------------------------------

def _potentials_flat_kernel(x_ref, w_ref, r_ref, pot_ref):
    """Flattened lane-dense path (used when in_features is not a 128-multiple).

    x_ref  : (TB, in_f)  int8  presynaptic spikes (0/1)
    w_ref  : (1,  TF)    f32   flattened weight slice, lane j -> weight[j//in_f, j%in_f]
    r_ref  : (in_f, TF)  bf16  one-hot replication matrix, R[i, j] = (j % in_f == i)
    pot_ref: (TB, TF)          activation potentials
    """
    # In-kernel cast (free on the VPU of a store-bound kernel).
    x = x_ref[...].astype(jnp.bfloat16)                       # (TB, in_f), exact 0/1
    # Lane replication x_rep[b, j] = x[b, j % in_f] via a one-hot matmul on the
    # otherwise-idle MXU: avoids any lane reshape and any HBM-side pre-tiling.
    # Exact: each R column selects a single 0/1 spike value.
    x_rep = jnp.dot(x, r_ref[...], preferred_element_type=jnp.float32)  # (TB, TF)
    pot_ref[...] = (x_rep * w_ref[...]).astype(pot_ref.dtype)


def _potentials_3d_kernel(x_ref, w_ref, pot_ref):
    """Natural-layout path (used when in_features is a multiple of 128).

    x_ref  : (TB, 1, in_f)     int8 presynaptic spikes
    w_ref  : (t_out, in_f)     f32  weight slice
    pot_ref: (TB, t_out, in_f)      activation potentials
    """
    x = x_ref[...].astype(jnp.float32)                        # (TB, 1, in_f)
    # Sublane broadcast of x over t_out, leading-dim broadcast of w over TB.
    pot_ref[...] = (x * w_ref[...][None, :, :]).astype(pot_ref.dtype)


# ---------------------------------------------------------------------------
# Tiling helpers
# ---------------------------------------------------------------------------

def _vmem_sizing():
    """(vmem_limit_bytes, working_set_budget_bytes), generation aware.

    v5e/v6e have 128 MiB VMEM per TensorCore -> allow big tiles; v7x has only
    64 MiB -> stay conservative.  Unknown / query failure -> v7x-safe defaults.
    """
    cap = None
    try:
        info_fn = getattr(pltpu, "get_tpu_info", None)
        if info_fn is not None:
            cap = getattr(info_fn(), "vmem_capacity_bytes", None)
    except Exception:  # pragma: no cover - interpreter / older runtimes
        cap = None
    if cap is not None and cap >= 100 * _MIB:                 # v5e / v6e
        return 64 * _MIB, 48 * _MIB
    return 32 * _MIB, 24 * _MIB                               # v7x or unknown


def _pick_batch_tile(B):
    """Batch tile that divides B exactly (no ragged blocks).

    TB == B (a full-dim block) is always layout-legal; when B is large it is
    tiled with a multiple of 32 so the int8 spike block sits on its native
    packed (32, 128) tiling.
    """
    if B <= 256:
        return B
    best = None
    for tb in range(32, min(B, 1024) + 1, 32):
        if B % tb == 0:
            best = tb
    return best if best is not None else B


def _pick_tiles(B, out_f, in_f, out_itemsize, ws_budget, flat):
    """Return (TB, t_out) with the full double-buffered working set budgeted."""
    TB = _pick_batch_tile(B)
    n_b = B // TB
    r_rows = -(-in_f // 16) * 16 if flat else 0               # bf16 R pads to 16 sublanes

    def ws_bytes(t_out):
        tf = t_out * in_f
        out_b = 2 * TB * tf * out_itemsize                    # output tile, double buffered
        if flat:
            w_b = 2 * 8 * tf * 4                              # (1, TF) f32 pads to 8 sublanes
            r_b = 2 * r_rows * tf * 2                         # resident replication matrix
        else:
            w_b = 2 * max(t_out, 8) * in_f * 4
            r_b = 0
        x_b = 2 * TB * max(in_f, 128)                         # int8 spike block (lane padded)
        return out_b + w_b + r_b + x_b

    divs = [d for d in range(1, out_f + 1) if out_f % d == 0]
    if flat:
        # Lane-dense output blocks (TF multiple of 128) whenever they exist.
        dense = [d for d in divs if (d * in_f) % 128 == 0]
    else:
        # Block second-minor (t_out) must be a multiple of 8 or the full dim.
        dense = [d for d in divs if d % 8 == 0 or d == out_f]
    cands = dense if dense else divs                          # fallback: masked stores, still correct
    fitting = [d for d in cands if ws_bytes(d) <= ws_budget] or [min(cands)]
    t_out = max(fitting)
    # v7x has two TensorCores: make sure a non-trivial problem produces >= 2 grid
    # steps along a "parallel" axis so both cores stream.
    if n_b * (out_f // t_out) == 1:
        smaller = [d for d in fitting if d < t_out]
        if smaller:
            t_out = max(smaller)
    return TB, t_out


# ---------------------------------------------------------------------------
# Forward wrapper
# ---------------------------------------------------------------------------

def snn_linear_forward(x_spikes, trace_in, weight, *, out_dtype=None):
    """Forward pass of IdeoNet Linear (delay=0).

    x_spikes : (B, in_features) bool        presynaptic spikes
    trace_in : (B, 1, in_features) f32      presynaptic trace
    weight   : (out_features, in_features)  f32

    Returns (potentials, trace_out), each (B, 1, out_features, in_features).
    `out_dtype` defaults to weight.dtype (exact module semantics); pass
    jnp.bfloat16 to halve the HBM writeback of this store-bound kernel if the
    downstream neuron update tolerates it.
    """
    B, in_f = x_spikes.shape
    out_f = weight.shape[0]
    out_dtype = jnp.dtype(weight.dtype if out_dtype is None else out_dtype)

    vmem_limit, ws_budget = _vmem_sizing()
    # int8 spikes: only (B, in_f) bytes of HBM; cast + replication happen in-kernel,
    # so no (B, out_f*in_f) copy of x ever round-trips HBM.
    x_i8 = x_spikes.astype(jnp.int8)

    flat = (in_f % 128) != 0
    TB, t_out = _pick_tiles(B, out_f, in_f, out_dtype.itemsize, ws_budget, flat)
    n_f = out_f // t_out
    n_b = B // TB
    # Feature outer, batch INNER: the weight block index is constant across
    # consecutive steps, so each weight tile is DMA'd from HBM once per column.
    grid = (n_f, n_b)
    cparams = pltpu.CompilerParams(
        dimension_semantics=("parallel", "parallel"),
        vmem_limit_bytes=vmem_limit,
    )

    if flat:
        F = out_f * in_f
        TF = t_out * in_f
        w_flat = weight.reshape(1, F)                         # contiguous -> free
        # One-hot replication matrix R[i, j] = (j % in_f == i).  Periodic with
        # period in_f, so a single TF-wide copy serves every feature block and
        # stays resident in VMEM (constant block index).  0/1 values are exact
        # in bf16 and the MXU accumulates in f32.
        lane = jnp.arange(TF, dtype=jnp.int32)
        repl = (lane[None, :] % in_f ==
                jnp.arange(in_f, dtype=jnp.int32)[:, None]).astype(jnp.bfloat16)
        pot = pl.pallas_call(
            _potentials_flat_kernel,
            grid=grid,
            in_specs=[
                pl.BlockSpec((TB, in_f), lambda f, b: (b, 0)),
                pl.BlockSpec((1, TF), lambda f, b: (0, f)),
                pl.BlockSpec((in_f, TF), lambda f, b: (0, 0)),
            ],
            out_specs=pl.BlockSpec((TB, TF), lambda f, b: (b, f)),
            out_shape=jax.ShapeDtypeStruct((B, F), out_dtype),
            compiler_params=cparams,
        )(x_i8, w_flat, repl)
    else:
        x3 = x_i8.reshape(B, 1, in_f)                         # free, keeps kernel broadcast trivial
        pot = pl.pallas_call(
            _potentials_3d_kernel,
            grid=grid,
            in_specs=[
                pl.BlockSpec((TB, 1, in_f), lambda f, b: (b, 0, 0)),
                pl.BlockSpec((t_out, in_f), lambda f, b: (f, 0)),
            ],
            out_specs=pl.BlockSpec((TB, t_out, in_f), lambda f, b: (b, f, 0)),
            out_shape=jax.ShapeDtypeStruct((B, out_f, in_f), out_dtype),
            compiler_params=cparams,
        )(x3, weight)

    # fold(): view(batch, -1, out_features, in_features) — contiguous reshape, free.
    potentials = pot.reshape(B, 1, out_f, in_f)

    # update_trace + fold: a pure broadcast of trace_in over out_features.  Kept
    # lazy in the wrapper (a kernel store would double the HBM writeback of an
    # already store-bound op); XLA keeps it fused into the consumer.
    trace_out = jnp.broadcast_to(
        trace_in.astype(jnp.float32).reshape(B, 1, 1, in_f), (B, 1, out_f, in_f)
    )
    # TODO(synk): delay > 0 would need the stateful per-synapse delay-buffer
    # recurrence of propagate_spike(); this module is constructed with delay=0.
    return potentials, trace_out


# ---------------------------------------------------------------------------
# Self-test
# ---------------------------------------------------------------------------

if __name__ == "__main__":
    # Module config: Linear(in_features=32, out_features=16, batch_size=2, dt=1.0, delay=0)
    in_features, out_features, batch_size = 32, 16, 2

    key = jax.random.PRNGKey(0)
    k_w, k_x, k_t = jax.random.split(key, 3)

    # reset_weights() default: uniform in [0, 1)
    weight = jax.random.uniform(k_w, (out_features, in_features), dtype=jnp.float32)
    x_spikes = jax.random.bernoulli(k_x, 0.3, (batch_size, in_features))
    trace_in = jax.random.uniform(k_t, (batch_size, 1, in_features), dtype=jnp.float32)

    fwd = jax.jit(snn_linear_forward)
    pot, trace_out = fwd(x_spikes, trace_in, weight)
    jax.block_until_ready((pot, trace_out))

    def reference(x, t_in, w):
        b, i = x.shape
        o = w.shape[0]
        xf = x.astype(jnp.float32)[:, None, :]
        pot_ref = (xf * w[None, :, :]).reshape(b, 1, o, i)
        tr_ref = jnp.broadcast_to(t_in[:, None, :, :], (b, 1, o, i))
        return pot_ref, tr_ref

    ref_pot, ref_tr = reference(x_spikes, trace_in, weight)
    assert pot.shape == (batch_size, 1, out_features, in_features)
    assert trace_out.shape == (batch_size, 1, out_features, in_features)
    assert jnp.allclose(pot, ref_pot), "potentials mismatch (flattened path)"
    assert jnp.allclose(trace_out, ref_tr), "trace mismatch"

    # Also exercise the natural-layout path (in_features a multiple of 128).
    in2, out2, b2 = 128, 16, 4
    k_w2, k_x2, k_t2 = jax.random.split(jax.random.PRNGKey(1), 3)
    w2 = jax.random.uniform(k_w2, (out2, in2), dtype=jnp.float32)
    x2 = jax.random.bernoulli(k_x2, 0.3, (b2, in2))
    t2 = jax.random.uniform(k_t2, (b2, 1, in2), dtype=jnp.float32)
    pot2, tr2 = jax.jit(snn_linear_forward)(x2, t2, w2)
    jax.block_until_ready((pot2, tr2))
    ref_pot2, ref_tr2 = reference(x2, t2, w2)
    assert jnp.allclose(pot2, ref_pot2), "potentials mismatch (natural path)"
    assert jnp.allclose(tr2, ref_tr2), "trace mismatch (natural path)"

    print("KERNEL_OK")
</pallas_src>

<mosaic_0001>
module attributes {stable_mosaic.version = 11 : i64} {
  func.func @_potentials_flat_kernel(%arg0: i32, %arg1: i32, %arg2: memref<2x32xi8, #tpu.memory_space<vmem>>, %arg3: memref<1x256xf32, #tpu.memory_space<vmem>>, %arg4: memref<32x256xbf16, #tpu.memory_space<vmem>>, %arg5: memref<2x256xf32, #tpu.memory_space<vmem>>) attributes {dimension_semantics = [#tpu.dimension_semantics<parallel>, #tpu.dimension_semantics<parallel>], iteration_bounds = array<i64: 2, 1>, scalar_prefetch = 0 : i64, scratch_operands = 0 : i64, tpu.core_type = #tpu.core_type<tc>, window_params = [{transform_indices = @transform_0, window_bounds = array<i64: 2, 32>}, {transform_indices = @transform_1, window_bounds = array<i64: 1, 256>}, {pipeline_mode = #tpu.pipeline_mode<synchronous>, transform_indices = @transform_2, window_bounds = array<i64: 32, 256>}, {transform_indices = @transform_3, window_bounds = array<i64: 2, 256>}]} {
    %c0 = arith.constant 0 : index
    %c0_0 = arith.constant 0 : index
    %0 = vector.load %arg2[%c0, %c0_0] : memref<2x32xi8, #tpu.memory_space<vmem>>, vector<2x32xi8>
    %1 = arith.sitofp %0 : vector<2x32xi8> to vector<2x32xbf16>
    %c0_1 = arith.constant 0 : index
    %c0_2 = arith.constant 0 : index
    %2 = vector.load %arg4[%c0_1, %c0_2] : memref<32x256xbf16, #tpu.memory_space<vmem>>, vector<32x256xbf16>
    %cst = arith.constant dense<0.000000e+00> : vector<2x256xf32>
    %3 = tpu.matmul %1, %2, %cst {dimension_numbers = #tpu.dot_dimension_numbers<[1], [0], [0], [1], [0, 0, 1, 1], [], []>} : vector<2x32xbf16>, vector<32x256xbf16>, vector<2x256xf32> -> vector<2x256xf32>
    %c0_3 = arith.constant 0 : index
    %c0_4 = arith.constant 0 : index
    %4 = vector.load %arg3[%c0_3, %c0_4] : memref<1x256xf32, #tpu.memory_space<vmem>>, vector<1x256xf32>
    %5 = vector.broadcast %4 : vector<1x256xf32> to vector<2x256xf32>
    %6 = arith.mulf %3, %5 : vector<2x256xf32>
    %c0_5 = arith.constant 0 : index
    %c0_6 = arith.constant 0 : index
    %7 = vector.load %arg5[%c0_5, %c0_6] : memref<2x256xf32, #tpu.memory_space<vmem>>, vector<2x256xf32>
    tpu.vector_store %arg5[%c0_5, %c0_6], %6 {strides = array<i32>} : memref<2x256xf32, #tpu.memory_space<vmem>>, vector<2x256xf32>,
    return
  }
  func.func @transform_0(%arg0: i32, %arg1: i32) -> (i32, i32) {
    %c0_i32 = arith.constant 0 : i32
    %c0_i32_0 = arith.constant 0 : i32
    return %arg1, %c0_i32 : i32, i32
  }
  func.func @transform_1(%arg0: i32, %arg1: i32) -> (i32, i32) {
    %c0_i32 = arith.constant 0 : i32
    %c0_i32_0 = arith.constant 0 : i32
    return %c0_i32, %arg0 : i32, i32
  }
  func.func @transform_2(%arg0: i32, %arg1: i32) -> (i32, i32) {
    %c0_i32 = arith.constant 0 : i32
    %c0_i32_0 = arith.constant 0 : i32
    %c0_i32_1 = arith.constant 0 : i32
    return %c0_i32, %c0_i32_0 : i32, i32
  }
  func.func @transform_3(%arg0: i32, %arg1: i32) -> (i32, i32) {
    %c0_i32 = arith.constant 0 : i32
    return %arg1, %arg0 : i32, i32
  }
}

</mosaic_0001>

<bundles_post_ra>
// kernel: snn_linear_forward.1
= control target key start
LH: loop header
LB: loop body
LE: loop exit
PB: predicated region body
PF: predicated region fallthrough
CT: control target
= control target key end

     0   :  { %s488_s12 = smov 0   ;;  %s490_s13 = smov 0   ;;  %s536_s0 = inlined_call_operand.vmem [shape: s8[2,32], index: 0, kind: input, shape index: {}]   ;;  %s537_s1 = inlined_call_operand.vmem [shape: f32[1,512], index: 1, kind: input, shape index: {}]   ;;  %s538_s2 = inlined_call_operand.vmem [shape: bf16[32,256], index: 2, kind: input, shape index: {}]   ;;  %s539_s3 = inlined_call_operand.vmem [shape: f32[2,512], index: 3, kind: output, shape index: {}]  }
   0x1   :  { %s492_s14 = smov 0  }
   0x2 LB: > { %s25_s15 = sadd.s32 1, %s461_s13  ;;  %p400_p0 = scmp.ge.s32.totalorder %s465_s14, 1  ;;  %s465_s14 = sphi %s492_s14, %s13_s14   ;;  %s461_s13 = sphi %s490_s13, %s541_s13   ;;  %s457_s12 = sphi %s488_s12, %s540_s12  }
   0x3   : > { %p27_p1 = scmp.ge.s32.totalorder %s25_s15, 2  ;;  %p159_p2 = scmp.lt.s32.totalorder %s465_s14, 3 }
   0x5   : > { %s543_s15 = smov (%p27_p1, %s25_s15), 0  ;;  %p160_p3 = pnand %p400_p0, %p159_p2 }
   0x6   : > { %v437_v0 = vld [vmem:[%s538_s2 + $0x4] ss:$8 sps:$4 sm:$0xff] (!%p160_p3)   ;;  %v439_v1 = vld [vmem:[%s538_s2] ss:$8 sps:$4 sm:$0xff] (!%p160_p3)   ;;  %v467_v2 = vmov (!%p160_p3), 0   ;;  %vm234_vm0 = vcmask (!%p160_p3), 261120   ;;  %v281_v7 = vlaneseq (!%p160_p3) }
   0x7   : > { %163 = sbr.rel (%p160_p3) target bundleno = 233 (0xe9), region = 32  ;;  %270 = vmatprep.mubr.bf16.mxu0 (!%p160_p3), %v467_v2  ;;  %238 = vmatprep.subr.bf16.mxu0 (!%p160_p3), %v437_v0  ;;  %v440_v3 = vld [vmem:[%s538_s2 + $0x14] ss:$8 sps:$4 sm:$0xff] (!%p160_p3)   ;;  %v442_v4 = vld [vmem:[%s538_s2 + $0x10] ss:$8 sps:$4 sm:$0xff] (!%p160_p3)   ;;  %s401_s26 = sshll.u32 (!%p160_p3), %s457_s12, 1 }
   0x8   : > { %239 = vmatpush1.bf16.msra.mxu0 (!%p160_p3), %v439_v1  ;;  %v208_v5 = vld [vmem:[%s536_s0] sm:$0x1] (!%p160_p3)  ;;  %p193_p4 = scmp.lt.s32.totalorder (!%p160_p3), %s401_s26, 3  ;;  %v282_v8 = vshrl.u32 (!%p160_p3), %v281_v7, 7 }
   0x9   : > { %240 = vmatprep.subr.bf16.mxu0 (!%p160_p3), %v440_v3  ;;  %v209_v6 = vunpack.c.l.s8.bf16 (!%p160_p3), %v208_v5 }
   0xa   : > { %v283_v9 = vsub.s32 (!%p160_p3), 0, %v282_v8  ;;  %v287_v11 = vsub.s32 (!%p160_p3), 1, %v282_v8 }
   0xc   : > { %241 = vmatpush1.bf16.msra.mxu0 (!%p160_p3), %v442_v4 }
   0xe   : > { %s545_s26 = smov (!%p193_p4, %s401_s26), 3 }
   0xf   : > { %408 = vmatmul.mubr.msk.bf16.vlgmr.msra.gmra.mrb[0].mxu0 %vm234_vm0, %v209_v6  ;;  %s195_s29 = scalar_lea.vmem %s537_s1, %s545_s26  ;;  %s403_s30 = sshll.u32 %s545_s26, 1 }
  0x10   : > { %v279_v10 = vld [vmem:[%s195_s29] sm:$0x3]  ;;  %s205_s6 = scalar_lea.vmem %s539_s3, %s403_s30 }
  0x11   : > { %v284_v12 = vrot.slane %v279_v10, %v283_v9  ;;  %v288_v13 = vrot.slane %v279_v10, %v287_v11 }
  0xe2   : > { %v272_v14 = vpop.f32.mrb[0].mxu0 }
  0xe3   : > { %v291_v15 = vmul.f32 %v284_v12, %v272_v14  ;;  %v274_v16 = vpop.f32.mrb[1].mxu0 }
  0xe4   : > { %v292_v17 = vmul.f32 %v288_v13, %v274_v16  ;;  %v276_v18 = vpop.f32.mrb[2].mxu0 }
  0xe5   : > { %v277_v19 = vpop.f32.mrb[3].mxu0 }
  0xe6   : > { %v295_v20 = vcombine.low %v291_v15, %v292_v17 }
  0xe8   : > { %409 = vst.sshfl [vmem:[%s205_s6] sm:$0x33 pattern:$0x76325410] %v295_v20 }
  0xe9 PF: > { %s13_s14 = sadd.s32 1, %s465_s14   ;;  %s540_s12 = smov %s461_s13 }
  0xea   : > { %p10_p5 = scmp.ge.s32.totalorder %s13_s14, 4   ;;  %s541_s13 = smov %s543_s15 }
  0xec   :  { %12 = sbr.rel (!%p10_p5) target bundleno = 2 (0x2), region = 65 }

</bundles_post_ra>
